<compile_context>
chip_gen: v7x
topology: tpu7x:2x2x1
jax: 0.10.0
libtpu: 0.0.40
codegen_flags: <defaults>
</compile_context>

<pallas_src>
import functools

import jax
import jax.numpy as jnp
from jax.experimental import pallas as pl
from jax.experimental.pallas import tpu as pltpu

INPUTS = 10
UNITS = 64
K_PAD = 16          # fc0 input features padded 10 -> 16 (sublane aligned)
DEFAULT_TM = 1024   # batch rows per grid step (production default)


def _mlp_kernel(x_ref,
                w0_ref, b0_ref,
                w1_ref, b1_ref,
                w2_ref, b2_ref,
                w3_ref, b3_ref,
                o_ref):
    x = x_ref[...]                                            # (TM, K_PAD) bf16

    # fc0 + ReLU (bf16 MXU operands, f32 accumulate; dropout = identity)
    h = jnp.dot(x, w0_ref[...], preferred_element_type=jnp.float32)
    h = jnp.maximum(h + b0_ref[...], 0.0)

    # fc1 + ReLU
    h = jnp.dot(h.astype(jnp.bfloat16), w1_ref[...],
                preferred_element_type=jnp.float32)
    h = jnp.maximum(h + b1_ref[...], 0.0)

    # fc2 + ReLU
    h = jnp.dot(h.astype(jnp.bfloat16), w2_ref[...],
                preferred_element_type=jnp.float32)
    h = jnp.maximum(h + b2_ref[...], 0.0)

    # fc3 (no activation)
    out = jnp.dot(h.astype(jnp.bfloat16), w3_ref[...],
                  preferred_element_type=jnp.float32) + b3_ref[...]
    o_ref[...] = out.astype(o_ref.dtype)


def _round_up(n, m):
    return ((n + m - 1) // m) * m


@functools.partial(jax.jit, static_argnames=("tm",))
def net_forward(x, params, *, tm=DEFAULT_TM):
    """Fused forward pass of Net. x: (B, INPUTS) float32 -> (B, 1) float32."""
    (w0, b0), (w1, b1), (w2, b2), (w3, b3) = params
    B = x.shape[0]

    # Shrink the tile for tiny batches; keep it tiling-friendly (multiple of 128).
    tm = min(tm, _round_up(B, 128))
    b_pad = _round_up(B, tm)

    # Pad batch to a tile multiple and features 10 -> K_PAD (zeros); cast bf16.
    x_p = jnp.pad(x.astype(jnp.bfloat16),
                  ((0, b_pad - B), (0, K_PAD - INPUTS)))

    grid = (b_pad // tm,)

    def _resident(shape):
        # Same block every step -> DMA'd once, stays resident in VMEM.
        return pl.BlockSpec(shape, lambda i: (0, 0))

    flops = 2 * b_pad * (K_PAD * UNITS + UNITS * UNITS + UNITS * UNITS + UNITS)
    param_bytes = ((K_PAD * UNITS + 2 * UNITS * UNITS + UNITS) * 2
                   + (3 * UNITS + 1) * 4)
    bytes_accessed = b_pad * K_PAD * 2 + b_pad * 4 + param_bytes

    out = pl.pallas_call(
        _mlp_kernel,
        out_shape=jax.ShapeDtypeStruct((b_pad, 1), jnp.float32),
        grid=grid,
        in_specs=[
            pl.BlockSpec((tm, K_PAD), lambda i: (i, 0)),        # x tile
            _resident((K_PAD, UNITS)), _resident((1, UNITS)),   # fc0
            _resident((UNITS, UNITS)), _resident((1, UNITS)),   # fc1
            _resident((UNITS, UNITS)), _resident((1, UNITS)),   # fc2
            _resident((UNITS, 1)), _resident((1, 1)),           # fc3
        ],
        out_specs=pl.BlockSpec((tm, 1), lambda i: (i, 0)),
        compiler_params=pltpu.CompilerParams(
            dimension_semantics=("parallel",),
            vmem_limit_bytes=32 * 1024 * 1024,
        ),
        cost_estimate=pl.CostEstimate(
            flops=flops, transcendentals=0, bytes_accessed=bytes_accessed),
    )(x_p, w0, b0, w1, b1, w2, b2, w3, b3)

    return out[:B]


def init_params(key):
    """PyTorch-Linear-style uniform fan-in init.

    Weights are stored transposed vs PyTorch, i.e. (in, out), in bf16 (MXU
    operands); fc0's weight is zero-padded to K_PAD input rows. Biases are
    float32 (1, out) rows.
    """
    def linear(k, fan_in, fan_out, pad_in=None):
        k_w, k_b = jax.random.split(k)
        bound = 1.0 / jnp.sqrt(fan_in)
        w = jax.random.uniform(k_w, (fan_in, fan_out), jnp.float32, -bound, bound)
        if pad_in is not None and pad_in > fan_in:
            w = jnp.pad(w, ((0, pad_in - fan_in), (0, 0)))
        b = jax.random.uniform(k_b, (1, fan_out), jnp.float32, -bound, bound)
        return w.astype(jnp.bfloat16), b

    k0, k1, k2, k3 = jax.random.split(key, 4)
    return (
        linear(k0, INPUTS, UNITS, pad_in=K_PAD),
        linear(k1, UNITS, UNITS),
        linear(k2, UNITS, UNITS),
        linear(k3, UNITS, 1),
    )


def _reference_bf16(x, params):
    """Same math as the kernel (bf16 operands, f32 accumulate / elementwise)."""
    (w0, b0), (w1, b1), (w2, b2), (w3, b3) = params
    h = x.astype(jnp.bfloat16)
    h = jnp.maximum(jnp.dot(h, w0[:INPUTS],
                            preferred_element_type=jnp.float32) + b0, 0.0)
    h = jnp.maximum(jnp.dot(h.astype(jnp.bfloat16), w1,
                            preferred_element_type=jnp.float32) + b1, 0.0)
    h = jnp.maximum(jnp.dot(h.astype(jnp.bfloat16), w2,
                            preferred_element_type=jnp.float32) + b2, 0.0)
    return jnp.dot(h.astype(jnp.bfloat16), w3,
                   preferred_element_type=jnp.float32) + b3


def _reference_f32(x, params):
    """Pure-f32 math (bf16 weights upcast) -- loose accuracy sanity check."""
    (w0, b0), (w1, b1), (w2, b2), (w3, b3) = params
    h = jnp.maximum(x @ w0[:INPUTS].astype(jnp.float32) + b0, 0.0)
    h = jnp.maximum(h @ w1.astype(jnp.float32) + b1, 0.0)
    h = jnp.maximum(h @ w2.astype(jnp.float32) + b2, 0.0)
    return h @ w3.astype(jnp.float32) + b3


if __name__ == "__main__":
    key = jax.random.PRNGKey(0)
    k_params, k_x = jax.random.split(key)

    params = init_params(k_params)
    batch = 300                      # small, but exercises a 3-step grid + padding
    x = jax.random.normal(k_x, (batch, INPUTS), dtype=jnp.float32)

    out = jax.block_until_ready(net_forward(x, params, tm=128))

    assert out.shape == (batch, 1), out.shape

    ref_bf16 = _reference_bf16(x, params)
    assert jnp.allclose(out, ref_bf16, atol=2e-3, rtol=2e-3), (
        "mismatch vs bf16 reference, max abs diff = "
        f"{float(jnp.max(jnp.abs(out - ref_bf16)))}")

    ref_f32 = _reference_f32(x, params)
    assert jnp.allclose(out, ref_f32, atol=5e-2, rtol=5e-2), (
        "mismatch vs f32 reference, max abs diff = "
        f"{float(jnp.max(jnp.abs(out - ref_f32)))}")

    print("KERNEL_OK")
</pallas_src>

<mosaic_0001>
module attributes {stable_mosaic.version = 11 : i64} {
  func.func @_mlp_kernel(%arg0: i32, %arg1: memref<128x16xbf16, #tpu.memory_space<vmem>>, %arg2: memref<16x64xbf16, #tpu.memory_space<vmem>>, %arg3: memref<1x64xf32, #tpu.memory_space<vmem>>, %arg4: memref<64x64xbf16, #tpu.memory_space<vmem>>, %arg5: memref<1x64xf32, #tpu.memory_space<vmem>>, %arg6: memref<64x64xbf16, #tpu.memory_space<vmem>>, %arg7: memref<1x64xf32, #tpu.memory_space<vmem>>, %arg8: memref<64x1xbf16, #tpu.memory_space<vmem>>, %arg9: memref<1x1xf32, #tpu.memory_space<vmem>>, %arg10: memref<128x1xf32, #tpu.memory_space<vmem>>) attributes {dimension_semantics = [#tpu.dimension_semantics<parallel>], iteration_bounds = array<i64: 3>, scalar_prefetch = 0 : i64, scratch_operands = 0 : i64, tpu.core_type = #tpu.core_type<tc>, window_params = [{transform_indices = @transform_0, window_bounds = array<i64: 128, 16>}, {pipeline_mode = #tpu.pipeline_mode<synchronous>, transform_indices = @transform_1, window_bounds = array<i64: 16, 64>}, {pipeline_mode = #tpu.pipeline_mode<synchronous>, transform_indices = @transform_2, window_bounds = array<i64: 1, 64>}, {pipeline_mode = #tpu.pipeline_mode<synchronous>, transform_indices = @transform_3, window_bounds = array<i64: 64, 64>}, {pipeline_mode = #tpu.pipeline_mode<synchronous>, transform_indices = @transform_4, window_bounds = array<i64: 1, 64>}, {pipeline_mode = #tpu.pipeline_mode<synchronous>, transform_indices = @transform_5, window_bounds = array<i64: 64, 64>}, {pipeline_mode = #tpu.pipeline_mode<synchronous>, transform_indices = @transform_6, window_bounds = array<i64: 1, 64>}, {pipeline_mode = #tpu.pipeline_mode<synchronous>, transform_indices = @transform_7, window_bounds = array<i64: 64, 1>}, {pipeline_mode = #tpu.pipeline_mode<synchronous>, transform_indices = @transform_8, window_bounds = array<i64: 1, 1>}, {transform_indices = @transform_9, window_bounds = array<i64: 128, 1>}]} {
    %c0 = arith.constant 0 : index
    %c0_0 = arith.constant 0 : index
    %0 = vector.load %arg1[%c0, %c0_0] : memref<128x16xbf16, #tpu.memory_space<vmem>>, vector<128x16xbf16>
    %c0_1 = arith.constant 0 : index
    %c0_2 = arith.constant 0 : index
    %1 = vector.load %arg2[%c0_1, %c0_2] : memref<16x64xbf16, #tpu.memory_space<vmem>>, vector<16x64xbf16>
    %cst = arith.constant dense<0.000000e+00> : vector<128x64xf32>
    %2 = tpu.matmul %0, %1, %cst {dimension_numbers = #tpu.dot_dimension_numbers<[1], [0], [0], [1], [0, 0, 1, 1], [], []>} : vector<128x16xbf16>, vector<16x64xbf16>, vector<128x64xf32> -> vector<128x64xf32>
    %c0_3 = arith.constant 0 : index
    %c0_4 = arith.constant 0 : index
    %3 = vector.load %arg3[%c0_3, %c0_4] : memref<1x64xf32, #tpu.memory_space<vmem>>, vector<1x64xf32>
    %4 = vector.broadcast %3 : vector<1x64xf32> to vector<128x64xf32>
    %5 = arith.addf %2, %4 : vector<128x64xf32>
    %cst_5 = arith.constant 0.000000e+00 : f32
    %6 = vector.broadcast %cst_5 : f32 to vector<128x64xf32>
    %7 = arith.maximumf %5, %6 : vector<128x64xf32>
    %8 = arith.truncf %7 : vector<128x64xf32> to vector<128x64xbf16>
    %c0_6 = arith.constant 0 : index
    %c0_7 = arith.constant 0 : index
    %9 = vector.load %arg4[%c0_6, %c0_7] : memref<64x64xbf16, #tpu.memory_space<vmem>>, vector<64x64xbf16>
    %cst_8 = arith.constant dense<0.000000e+00> : vector<128x64xf32>
    %10 = tpu.matmul %8, %9, %cst_8 {dimension_numbers = #tpu.dot_dimension_numbers<[1], [0], [0], [1], [0, 0, 1, 1], [], []>} : vector<128x64xbf16>, vector<64x64xbf16>, vector<128x64xf32> -> vector<128x64xf32>
    %c0_9 = arith.constant 0 : index
    %c0_10 = arith.constant 0 : index
    %11 = vector.load %arg5[%c0_9, %c0_10] : memref<1x64xf32, #tpu.memory_space<vmem>>, vector<1x64xf32>
    %12 = vector.broadcast %11 : vector<1x64xf32> to vector<128x64xf32>
    %13 = arith.addf %10, %12 : vector<128x64xf32>
    %cst_11 = arith.constant 0.000000e+00 : f32
    %14 = vector.broadcast %cst_11 : f32 to vector<128x64xf32>
    %15 = arith.maximumf %13, %14 : vector<128x64xf32>
    %16 = arith.truncf %15 : vector<128x64xf32> to vector<128x64xbf16>
    %c0_12 = arith.constant 0 : index
    %c0_13 = arith.constant 0 : index
    %17 = vector.load %arg6[%c0_12, %c0_13] : memref<64x64xbf16, #tpu.memory_space<vmem>>, vector<64x64xbf16>
    %cst_14 = arith.constant dense<0.000000e+00> : vector<128x64xf32>
    %18 = tpu.matmul %16, %17, %cst_14 {dimension_numbers = #tpu.dot_dimension_numbers<[1], [0], [0], [1], [0, 0, 1, 1], [], []>} : vector<128x64xbf16>, vector<64x64xbf16>, vector<128x64xf32> -> vector<128x64xf32>
    %c0_15 = arith.constant 0 : index
    %c0_16 = arith.constant 0 : index
    %19 = vector.load %arg7[%c0_15, %c0_16] : memref<1x64xf32, #tpu.memory_space<vmem>>, vector<1x64xf32>
    %20 = vector.broadcast %19 : vector<1x64xf32> to vector<128x64xf32>
    %21 = arith.addf %18, %20 : vector<128x64xf32>
    %cst_17 = arith.constant 0.000000e+00 : f32
    %22 = vector.broadcast %cst_17 : f32 to vector<128x64xf32>
    %23 = arith.maximumf %21, %22 : vector<128x64xf32>
    %24 = arith.truncf %23 : vector<128x64xf32> to vector<128x64xbf16>
    %c0_18 = arith.constant 0 : index
    %c0_19 = arith.constant 0 : index
    %25 = vector.load %arg8[%c0_18, %c0_19] : memref<64x1xbf16, #tpu.memory_space<vmem>>, vector<64x1xbf16>
    %cst_20 = arith.constant dense<0.000000e+00> : vector<128x1xf32>
    %26 = tpu.matmul %24, %25, %cst_20 {dimension_numbers = #tpu.dot_dimension_numbers<[1], [0], [0], [1], [0, 0, 1, 1], [], []>} : vector<128x64xbf16>, vector<64x1xbf16>, vector<128x1xf32> -> vector<128x1xf32>
    %c0_21 = arith.constant 0 : index
    %c0_22 = arith.constant 0 : index
    %27 = vector.load %arg9[%c0_21, %c0_22] : memref<1x1xf32, #tpu.memory_space<vmem>>, vector<1x1xf32>
    %28 = vector.broadcast %27 : vector<1x1xf32> to vector<128x1xf32>
    %29 = arith.addf %26, %28 : vector<128x1xf32>
    %c0_23 = arith.constant 0 : index
    %c0_24 = arith.constant 0 : index
    %30 = vector.load %arg10[%c0_23, %c0_24] : memref<128x1xf32, #tpu.memory_space<vmem>>, vector<128x1xf32>
    tpu.vector_store %arg10[%c0_23, %c0_24], %29 {strides = array<i32>} : memref<128x1xf32, #tpu.memory_space<vmem>>, vector<128x1xf32>,
    return
  }
  func.func @transform_0(%arg0: i32) -> (i32, i32) {
    %c0_i32 = arith.constant 0 : i32
    %c0_i32_0 = arith.constant 0 : i32
    return %arg0, %c0_i32 : i32, i32
  }
  func.func @transform_1(%arg0: i32) -> (i32, i32) {
    %c0_i32 = arith.constant 0 : i32
    %c0_i32_0 = arith.constant 0 : i32
    %c0_i32_1 = arith.constant 0 : i32
    return %c0_i32, %c0_i32_0 : i32, i32
  }
  func.func @transform_2(%arg0: i32) -> (i32, i32) {
    %c0_i32 = arith.constant 0 : i32
    %c0_i32_0 = arith.constant 0 : i32
    %c0_i32_1 = arith.constant 0 : i32
    return %c0_i32, %c0_i32_0 : i32, i32
  }
  func.func @transform_3(%arg0: i32) -> (i32, i32) {
    %c0_i32 = arith.constant 0 : i32
    %c0_i32_0 = arith.constant 0 : i32
    %c0_i32_1 = arith.constant 0 : i32
    return %c0_i32, %c0_i32_0 : i32, i32
  }
  func.func @transform_4(%arg0: i32) -> (i32, i32) {
    %c0_i32 = arith.constant 0 : i32
    %c0_i32_0 = arith.constant 0 : i32
    %c0_i32_1 = arith.constant 0 : i32
    return %c0_i32, %c0_i32_0 : i32, i32
  }
  func.func @transform_5(%arg0: i32) -> (i32, i32) {
    %c0_i32 = arith.constant 0 : i32
    %c0_i32_0 = arith.constant 0 : i32
    %c0_i32_1 = arith.constant 0 : i32
    return %c0_i32, %c0_i32_0 : i32, i32
  }
  func.func @transform_6(%arg0: i32) -> (i32, i32) {
    %c0_i32 = arith.constant 0 : i32
    %c0_i32_0 = arith.constant 0 : i32
    %c0_i32_1 = arith.constant 0 : i32
    return %c0_i32, %c0_i32_0 : i32, i32
  }
  func.func @transform_7(%arg0: i32) -> (i32, i32) {
    %c0_i32 = arith.constant 0 : i32
    %c0_i32_0 = arith.constant 0 : i32
    %c0_i32_1 = arith.constant 0 : i32
    return %c0_i32, %c0_i32_0 : i32, i32
  }
  func.func @transform_8(%arg0: i32) -> (i32, i32) {
    %c0_i32 = arith.constant 0 : i32
    %c0_i32_0 = arith.constant 0 : i32
    %c0_i32_1 = arith.constant 0 : i32
    return %c0_i32, %c0_i32_0 : i32, i32
  }
  func.func @transform_9(%arg0: i32) -> (i32, i32) {
    %c0_i32 = arith.constant 0 : i32
    %c0_i32_0 = arith.constant 0 : i32
    return %arg0, %c0_i32 : i32, i32
  }
}

</mosaic_0001>

<bundles_post_ra>
// kernel: net_forward.1
= control target key start
LH: loop header
LB: loop body
LE: loop exit
PB: predicated region body
PF: predicated region fallthrough
CT: control target
= control target key end

     0   :  { %s1451_s11 = smov 0   ;;  %s1586_s0 = inlined_call_operand.vmem [shape: bf16[384,16], index: 0, kind: input, shape index: {}]   ;;  %s1587_s1 = inlined_call_operand.vmem [shape: bf16[16,64], index: 1, kind: input, shape index: {}]   ;;  %s1588_s2 = inlined_call_operand.vmem [shape: f32[1,64], index: 2, kind: input, shape index: {}]   ;;  %s1589_s3 = inlined_call_operand.vmem [shape: bf16[64,64], index: 3, kind: input, shape index: {}]   ;;  %s1590_s4 = inlined_call_operand.vmem [shape: f32[1,64], index: 4, kind: input, shape index: {}]   ;;  %s1591_s5 = inlined_call_operand.vmem [shape: bf16[64,64], index: 5, kind: input, shape index: {}]   ;;  %s1592_s6 = inlined_call_operand.vmem [shape: f32[1,64], index: 6, kind: input, shape index: {}]   ;;  %s1593_s7 = inlined_call_operand.vmem [shape: bf16[64,1], index: 7, kind: input, shape index: {}]   ;;  %s1594_s8 = inlined_call_operand.<no memory space> [shape: f32[1,1], index: 8, kind: input, shape index: {}]   ;;  %s1595_s9 = inlined_call_operand.vmem [shape: f32[384,1], index: 9, kind: output, shape index: {}]  }
   0x1   :  { %v14_v0 = vstv %s1594_s8 }
   0x2   :  { %15 = vst [vmem:[#allocation2] sm:$0x1] %v14_v0 }
   0x3 LB: > { %s1158_s12 = sadd.s32 4294967295, %s1396_s11   ;;  %p1162_p0 = scmp.ge.s32.totalorder %s1396_s11, 1  ;;  %s1396_s11 = sphi %s1451_s11, %s21_s11  }
   0x4   : > { %p290_p1 = scmp.lt.s32.totalorder %s1396_s11, 4 }
   0x6   : > { %p291_p2 = pnand %p1162_p0, %p290_p1 }
   0x7   : > { %v1369_v1 = vld [vmem:[%s1587_s1] sm:$0xff] (!%p291_p2)   ;;  %s1163_s8 = sshll.u32 (!%p291_p2), %s1158_s12, 4  ;;  %v1379_v3 = vld [vmem:[%s1589_s3 + $0x8] sm:$0xff] (!%p291_p2)   ;;  %vm410_vm0 = vcmask (!%p291_p2), 130048   ;;  %v1380_v12 = vld [vmem:[%s1589_s3 + $0x10] sm:$0xff] (!%p291_p2)   ;;  %vm595_vm1 = vcmask (!%p291_p2), 523264  }
   0x8   : > { %294 = sbr.rel (%p291_p2) target bundleno = 928 (0x3a0), region = 56  ;;  %p327_p3 = scmp.lt.s32.totalorder (!%p291_p2), %s1163_s8, 47  ;;  %1271 = vmatprep.subr.bf16.mxu0 (!%p291_p2), %v1369_v1  ;;  %v1378_v2 = vld [vmem:[%s1589_s3] sm:$0xff] (!%p291_p2)   ;;  %v1381_v13 = vld [vmem:[%s1589_s3 + $0x18] sm:$0xff] (!%p291_p2)   ;;  %v1383_v15 = vld [vmem:[%s1591_s5 + $0x8] sm:$0xff] (!%p291_p2)   ;;  %vm1085_vm2 = vcmask (!%p291_p2), 7168  }
   0x9   : > { %1272 = vmatpush3.bf16.msra.mxu0 (!%p291_p2), %v1369_v1  ;;  %1289 = vmatprep.subr.bf16.mxu1 (!%p291_p2), %v1378_v2  ;;  %v1382_v14 = vld [vmem:[%s1591_s5] sm:$0xff] (!%p291_p2)   ;;  %v1384_v16 = vld [vmem:[%s1591_s5 + $0x10] sm:$0xff] (!%p291_p2)  }
   0xa   : > { %1290 = vmatpush3.bf16.msra.mxu1 (!%p291_p2), %v1378_v2  ;;  %1313 = vmatprep.subr.bf16.mxu0 (!%p291_p2), %v1382_v14  ;;  %v1167_v17 = vld [vmem:[%s1588_s2] ss:$0 sm:$0xff] (!%p291_p2) }
   0xb   : > { %1291 = vmatprep.subr.bf16.mxu1 (!%p291_p2), %v1379_v3 }
   0xe   : > { %1292 = vmatpush3.bf16.msra.mxu1 (!%p291_p2), %v1379_v3 }
   0xf   : > { %s1597_s8 = smov (!%p327_p3, %s1163_s8), 47  ;;  %1293 = vmatprep.subr.bf16.mxu1 %v1380_v12 }
  0x10   : > { %s1164_s19 = sshll.u32 %s1597_s8, 2  ;;  %s1166_s29 = sshll.u32 %s1597_s8, 3 }
  0x11   : > { %s330_s22 = scalar_lea.vmem %s1586_s0, %s1164_s19  ;;  %s1549_s12 = scalar_lea.vmem %s1595_s9, %s1166_s29 }
  0x12   : > { %v1370_v4 = vld [vmem:[%s330_s22] sm:$0xff]   ;;  %v1371_v5 = vld [vmem:[%s330_s22 + $0x8] sm:$0xff]   ;;  %v1372_v6 = vld [vmem:[%s330_s22 + $0x10] sm:$0xff]   ;;  %1294 = vmatpush3.bf16.msra.mxu1 %v1380_v12 }
  0x13   : > { %1273 = vmatprep.mubr.msk.bf16.mxu0 %vm410_vm0, %v1370_v4  ;;  %v1373_v7 = vld [vmem:[%s330_s22 + $0x18] sm:$0xff]   ;;  %v1374_v8 = vld [vmem:[%s330_s22 + $0x20] sm:$0xff]   ;;  %v1375_v9 = vld [vmem:[%s330_s22 + $0x28] sm:$0xff]   ;;  %1295 = vmatprep.subr.bf16.mxu1 %v1381_v13 }
  0x14   : > { %1274 = vmatmul.mubr.msk.bf16.vlgmr.msra.gmra.mrb[0].mxu0 %vm410_vm0, %v1371_v5  ;;  %v1376_v10 = vld [vmem:[%s330_s22 + $0x30] sm:$0xff]   ;;  %v1377_v11 = vld [vmem:[%s330_s22 + $0x38] sm:$0xff]   ;;  %v1387_v12 = vld [vmem:[%s1593_s7 + $0x8] sm:$0xff]  }
  0x15   : > { %1277 = vmatprep.mubr.msk.bf16.mxu0 %vm410_vm0, %v1372_v6  ;;  %1314 = vmatpush3.bf16.msra.mxu0 %v1382_v14  ;;  %v1185_v14 = vld [vmem:[%s1590_s4] ss:$0 sm:$0xff] }
  0x16   : > { %1296 = vmatpush3.bf16.msra.mxu1 %v1381_v13  ;;  %1315 = vmatprep.subr.bf16.mxu0 %v1383_v15  ;;  %v1388_v13 = vld [vmem:[%s1593_s7 + $0x10] sm:$0xff]  }
  0x19   : > { %1316 = vmatpush3.bf16.msra.mxu0 %v1383_v15 }
  0x1a   : > { %1317 = vmatprep.subr.bf16.mxu0 %v1384_v16 }
  0x1c   : > { %1278 = vmatmul.mubr.msk.bf16.gmra.mrb[4].mxu0 %vm410_vm0, %v1373_v7 }
  0x1d   : > { %1281 = vmatprep.mubr.msk.bf16.mxu0 %vm410_vm0, %v1374_v8  ;;  %1318 = vmatpush3.bf16.msra.mxu0 %v1384_v16 }
  0x24   : > { %1282 = vmatmul.mubr.msk.bf16.gmra.mrb[8].mxu0 %vm410_vm0, %v1375_v9 }
  0x25   : > { %1285 = vmatprep.mubr.msk.bf16.mxu0 %vm410_vm0, %v1376_v10  ;;  %v1385_v10 = vld [vmem:[%s1591_s5 + $0x18] sm:$0xff]  }
  0x26   : > { %1319 = vmatprep.subr.bf16.mxu0 %v1385_v10 }
  0x27   : > { %1320 = vmatpush3.bf16.msra.mxu0 %v1385_v10 }
  0x2c   : > { %1286 = vmatmul.mubr.msk.bf16.gmra.mrb[12].mxu0 %vm410_vm0, %v1377_v11  ;;  %v1386_v11 = vld [vmem:[%s1593_s7] sm:$0xff]  }
  0x2d   : > { %1337 = vmatprep.subr.bf16.mxu1 %v1386_v11 }
  0xe7   : > { %v1275_v18 = vpop.f32.mrb[0].mxu0 }
  0xe8   : > { %v478_v19 = vadd.f32 %v1275_v18, %v1167_v17  ;;  %v469_v20 = vpop.f32.mrb[1].mxu0 }
  0xe9   : > { %v470_v21 = vadd.f32 %v1167_v17, %v469_v20  ;;  %v1276_v22 = vpop.f32.mrb[2].mxu0 }
  0xea   : > { %v481_v23 = vadd.f32 %v1276_v22, %v1167_v17  ;;  %v472_v24 = vpop.f32.mrb[3].mxu0  ;;  %v534_v26 = vmax.f32 %v478_v19, 0.0 }
  0xeb   : > { %v473_v25 = vadd.f32 %v1167_v17, %v472_v24  ;;  %v532_v28 = vmax.f32 %v470_v21, 0.0 }
  0xec   : > { %v535_v27 = vmax.f32 %v481_v23, 0.0 }
  0xed   : > { %v533_v29 = vmax.f32 %v473_v25, 0.0 }
  0xee   : > { %v549_v30 = vpack.c.bf16 %v535_v27, %v534_v26 }
  0xef   : > { %v1279_v31 = vpop.f32.mrb[4].mxu0  ;;  %v548_v32 = vpack.c.bf16 %v533_v29, %v532_v28 }
  0xf0   : > { %v494_v33 = vadd.f32 %v1279_v31, %v1167_v17  ;;  %v485_v34 = vpop.f32.mrb[5].mxu0 }
  0xf1   : > { %v486_v35 = vadd.f32 %v1167_v17, %v485_v34  ;;  %v1280_v36 = vpop.f32.mrb[6].mxu0  ;;  %1297 = vmatprep.mubr.msk.bf16.mxu1 %vm595_vm1, %v548_v32 }
  0xf2   : > { %v497_v37 = vadd.f32 %v1280_v36, %v1167_v17  ;;  %v488_v38 = vpop.f32.mrb[7].mxu0  ;;  %1298 = vmatmul.mubr.msk.bf16.vlgmr.msra.gmra.mrb[0].mxu1 %vm595_vm1, %v549_v30  ;;  %v538_v40 = vmax.f32 %v494_v33, 0.0 }
  0xf3   : > { %v489_v39 = vadd.f32 %v1167_v17, %v488_v38  ;;  %v536_v42 = vmax.f32 %v486_v35, 0.0  ;;  %1338 = vmatpush3.bf16.msra.mxu1 %v1386_v11 }
  0xf4   : > { %v539_v41 = vmax.f32 %v497_v37, 0.0  ;;  %1339 = vmatprep.subr.bf16.mxu1 %v1387_v12 }
  0xf5   : > { %v537_v43 = vmax.f32 %v489_v39, 0.0 }
  0xf6   : > { %v551_v44 = vpack.c.bf16 %v539_v41, %v538_v40 }
  0xf7   : > { %v550_v45 = vpack.c.bf16 %v537_v43, %v536_v42  ;;  %v1283_v46 = vpop.f32.mrb[8].mxu0  ;;  %1340 = vmatpush3.bf16.msra.mxu1 %v1387_v12 }
  0xf8   : > { %v510_v47 = vadd.f32 %v1283_v46, %v1167_v17  ;;  %v501_v48 = vpop.f32.mrb[9].mxu0  ;;  %1341 = vmatprep.subr.bf16.mxu1 %v1388_v13 }
  0xf9   : > { %v502_v49 = vadd.f32 %v1167_v17, %v501_v48  ;;  %v1284_v50 = vpop.f32.mrb[10].mxu0  ;;  %1301 = vmatprep.mubr.msk.bf16.mxu1 %vm595_vm1, %v550_v45 }
  0xfa   : > { %v513_v51 = vadd.f32 %v1284_v50, %v1167_v17  ;;  %v504_v52 = vpop.f32.mrb[11].mxu0  ;;  %1302 = vmatmul.mubr.msk.bf16.gmra.mrb[4].mxu1 %vm595_vm1, %v551_v44  ;;  %v542_v54 = vmax.f32 %v510_v47, 0.0 }
  0xfb   : > { %v505_v53 = vadd.f32 %v1167_v17, %v504_v52  ;;  %v540_v56 = vmax.f32 %v502_v49, 0.0  ;;  %1342 = vmatpush3.bf16.msra.mxu1 %v1388_v13 }
  0xfc   : > { %v543_v55 = vmax.f32 %v513_v51, 0.0 }
  0xfd   : > { %v541_v57 = vmax.f32 %v505_v53, 0.0 }
  0xfe   : > { %v553_v58 = vpack.c.bf16 %v543_v55, %v542_v54 }
  0xff   : > { %v552_v59 = vpack.c.bf16 %v541_v57, %v540_v56  ;;  %v1287_v60 = vpop.f32.mrb[12].mxu0 }
 0x100   : > { %v526_v61 = vadd.f32 %v1287_v60, %v1167_v17  ;;  %v517_v62 = vpop.f32.mrb[13].mxu0 }
 0x101   : > { %v518_v63 = vadd.f32 %v1167_v17, %v517_v62  ;;  %v1288_v0 = vpop.f32.mrb[14].mxu0  ;;  %1305 = vmatprep.mubr.msk.bf16.mxu1 %vm595_vm1, %v552_v59 }
 0x102   : > { %v529_v1 = vadd.f32 %v1288_v0, %v1167_v17  ;;  %v520_v2 = vpop.f32.mrb[15].mxu0  ;;  %1306 = vmatmul.mubr.msk.bf16.gmra.mrb[8].mxu1 %vm595_vm1, %v553_v58  ;;  %v546_v4 = vmax.f32 %v526_v61, 0.0 }
 0x103   : > { %v521_v3 = vadd.f32 %v1167_v17, %v520_v2  ;;  %v544_v6 = vmax.f32 %v518_v63, 0.0 }
 0x104   : > { %v547_v5 = vmax.f32 %v529_v1, 0.0 }
 0x105   : > { %v545_v7 = vmax.f32 %v521_v3, 0.0 }
 0x106   : > { %v555_v8 = vpack.c.bf16 %v547_v5, %v546_v4 }
 0x107   : > { %v554_v9 = vpack.c.bf16 %v545_v7, %v544_v6  ;;  %v1389_v7 = vld [vmem:[%s1593_s7 + $0x18] sm:$0xff]  }
 0x108   : > { %1343 = vmatprep.subr.bf16.mxu1 %v1389_v7 }
 0x109   : > { %1309 = vmatprep.mubr.msk.bf16.mxu1 %vm595_vm1, %v554_v9  ;;  %1344 = vmatpush3.bf16.msra.mxu1 %v1389_v7 }
 0x10a   : > { %1310 = vmatmul.mubr.msk.bf16.gmra.mrb[12].mxu1 %vm595_vm1, %v555_v8  ;;  %v1198_v8 = vld [vmem:[%s1592_s6] ss:$0 sm:$0xff] }
 0x1c5   : > { %v1299_v15 = vpop.f32.mrb[0].mxu1 }
 0x1c6   : > { %v663_v16 = vadd.f32 %v1299_v15, %v1185_v14  ;;  %v654_v17 = vpop.f32.mrb[1].mxu1 }
 0x1c7   : > { %v655_v18 = vadd.f32 %v1185_v14, %v654_v17  ;;  %v1300_v19 = vpop.f32.mrb[2].mxu1 }
 0x1c8   : > { %v666_v20 = vadd.f32 %v1300_v19, %v1185_v14  ;;  %v657_v21 = vpop.f32.mrb[3].mxu1  ;;  %v719_v23 = vmax.f32 %v663_v16, 0.0 }
 0x1c9   : > { %v658_v22 = vadd.f32 %v1185_v14, %v657_v21  ;;  %v717_v25 = vmax.f32 %v655_v18, 0.0 }
 0x1ca   : > { %v720_v24 = vmax.f32 %v666_v20, 0.0 }
 0x1cb   : > { %v718_v26 = vmax.f32 %v658_v22, 0.0 }
 0x1cc   : > { %v734_v27 = vpack.c.bf16 %v720_v24, %v719_v23 }
 0x1cd   : > { %v733_v28 = vpack.c.bf16 %v718_v26, %v717_v25  ;;  %v1303_v29 = vpop.f32.mrb[4].mxu1 }
 0x1ce   : > { %v679_v30 = vadd.f32 %v1303_v29, %v1185_v14  ;;  %v670_v31 = vpop.f32.mrb[5].mxu1 }
 0x1cf   : > { %v671_v32 = vadd.f32 %v1185_v14, %v670_v31  ;;  %v1304_v33 = vpop.f32.mrb[6].mxu1  ;;  %1321 = vmatprep.mubr.msk.bf16.mxu0 %vm595_vm1, %v733_v28 }
 0x1d0   : > { %v682_v34 = vadd.f32 %v1304_v33, %v1185_v14  ;;  %v673_v35 = vpop.f32.mrb[7].mxu1  ;;  %1322 = vmatmul.mubr.msk.bf16.vlgmr.msra.gmra.mrb[16].mxu0 %vm595_vm1, %v734_v27  ;;  %v723_v37 = vmax.f32 %v679_v30, 0.0 }
 0x1d1   : > { %v674_v36 = vadd.f32 %v1185_v14, %v673_v35  ;;  %v721_v39 = vmax.f32 %v671_v32, 0.0 }
 0x1d2   : > { %v724_v38 = vmax.f32 %v682_v34, 0.0 }
 0x1d3   : > { %v722_v40 = vmax.f32 %v674_v36, 0.0 }
 0x1d4   : > { %v736_v41 = vpack.c.bf16 %v724_v38, %v723_v37 }
 0x1d5   : > { %v735_v42 = vpack.c.bf16 %v722_v40, %v721_v39  ;;  %v1307_v43 = vpop.f32.mrb[8].mxu1 }
 0x1d6   : > { %v695_v44 = vadd.f32 %v1307_v43, %v1185_v14  ;;  %v686_v45 = vpop.f32.mrb[9].mxu1 }
 0x1d7   : > { %v687_v46 = vadd.f32 %v1185_v14, %v686_v45  ;;  %v1308_v47 = vpop.f32.mrb[10].mxu1  ;;  %1325 = vmatprep.mubr.msk.bf16.mxu0 %vm595_vm1, %v735_v42 }
 0x1d8   : > { %v698_v48 = vadd.f32 %v1308_v47, %v1185_v14  ;;  %v689_v49 = vpop.f32.mrb[11].mxu1  ;;  %1326 = vmatmul.mubr.msk.bf16.gmra.mrb[20].mxu0 %vm595_vm1, %v736_v41  ;;  %v727_v51 = vmax.f32 %v695_v44, 0.0 }
 0x1d9   : > { %v690_v50 = vadd.f32 %v1185_v14, %v689_v49  ;;  %v725_v53 = vmax.f32 %v687_v46, 0.0 }
 0x1da   : > { %v728_v52 = vmax.f32 %v698_v48, 0.0 }
 0x1db   : > { %v726_v54 = vmax.f32 %v690_v50, 0.0 }
 0x1dc   : > { %v738_v55 = vpack.c.bf16 %v728_v52, %v727_v51 }
 0x1dd   : > { %v737_v56 = vpack.c.bf16 %v726_v54, %v725_v53  ;;  %v1311_v57 = vpop.f32.mrb[12].mxu1 }
 0x1de   : > { %v711_v58 = vadd.f32 %v1311_v57, %v1185_v14  ;;  %v702_v59 = vpop.f32.mrb[13].mxu1 }
 0x1df   : > { %v703_v60 = vadd.f32 %v1185_v14, %v702_v59  ;;  %v1312_v61 = vpop.f32.mrb[14].mxu1  ;;  %1329 = vmatprep.mubr.msk.bf16.mxu0 %vm595_vm1, %v737_v56 }
 0x1e0   : > { %v714_v62 = vadd.f32 %v1312_v61, %v1185_v14  ;;  %v705_v63 = vpop.f32.mrb[15].mxu1  ;;  %1330 = vmatmul.mubr.msk.bf16.gmra.mrb[24].mxu0 %vm595_vm1, %v738_v55  ;;  %v731_v1 = vmax.f32 %v711_v58, 0.0 }
 0x1e1   : > { %v706_v0 = vadd.f32 %v1185_v14, %v705_v63  ;;  %v729_v3 = vmax.f32 %v703_v60, 0.0 }
 0x1e2   : > { %v732_v2 = vmax.f32 %v714_v62, 0.0 }
 0x1e3   : > { %v730_v4 = vmax.f32 %v706_v0, 0.0 }
 0x1e4   : > { %v740_v5 = vpack.c.bf16 %v732_v2, %v731_v1  ;;  %v1211_v1 = vld [vmem:[#allocation2] ss:$0 sm:$0xff] }
 0x1e5   : > { %v739_v6 = vpack.c.bf16 %v730_v4, %v729_v3 }
 0x1e7   : > { %1333 = vmatprep.mubr.msk.bf16.mxu0 %vm595_vm1, %v739_v6 }
 0x1e8   : > { %1334 = vmatmul.mubr.msk.bf16.gmra.mrb[28].mxu0 %vm595_vm1, %v740_v5 }
 0x2a3   : > { %v1323_v9 = vpop.f32.mrb[16].mxu0 }
 0x2a4   : > { %v847_v10 = vadd.f32 %v1323_v9, %v1198_v8  ;;  %v838_v11 = vpop.f32.mrb[17].mxu0 }
 0x2a5   : > { %v839_v12 = vadd.f32 %v1198_v8, %v838_v11  ;;  %v1324_v13 = vpop.f32.mrb[18].mxu0 }
 0x2a6   : > { %v850_v14 = vadd.f32 %v1324_v13, %v1198_v8  ;;  %v841_v15 = vpop.f32.mrb[19].mxu0  ;;  %v903_v17 = vmax.f32 %v847_v10, 0.0 }
 0x2a7   : > { %v842_v16 = vadd.f32 %v1198_v8, %v841_v15  ;;  %v901_v19 = vmax.f32 %v839_v12, 0.0 }
 0x2a8   : > { %v904_v18 = vmax.f32 %v850_v14, 0.0 }
 0x2a9   : > { %v902_v20 = vmax.f32 %v842_v16, 0.0 }
 0x2aa   : > { %v918_v21 = vpack.c.bf16 %v904_v18, %v903_v17 }
 0x2ab   : > { %v917_v22 = vpack.c.bf16 %v902_v20, %v901_v19  ;;  %v1327_v23 = vpop.f32.mrb[20].mxu0 }
 0x2ac   : > { %v863_v24 = vadd.f32 %v1327_v23, %v1198_v8  ;;  %v854_v25 = vpop.f32.mrb[21].mxu0 }
 0x2ad   : > { %v855_v26 = vadd.f32 %v1198_v8, %v854_v25  ;;  %v1328_v27 = vpop.f32.mrb[22].mxu0  ;;  %1345 = vmatprep.mubr.msk.bf16.mxu1 %vm595_vm1, %v917_v22 }
 0x2ae   : > { %v866_v28 = vadd.f32 %v1328_v27, %v1198_v8  ;;  %v857_v29 = vpop.f32.mrb[23].mxu0  ;;  %1346 = vmatmul.mubr.msk.bf16.vlgmr.msra.gmra.mrb[16].mxu1 %vm595_vm1, %v918_v21  ;;  %v907_v31 = vmax.f32 %v863_v24, 0.0 }
 0x2af   : > { %v858_v30 = vadd.f32 %v1198_v8, %v857_v29  ;;  %v905_v33 = vmax.f32 %v855_v26, 0.0 }
 0x2b0   : > { %v908_v32 = vmax.f32 %v866_v28, 0.0 }
 0x2b1   : > { %v906_v34 = vmax.f32 %v858_v30, 0.0 }
 0x2b2   : > { %v920_v35 = vpack.c.bf16 %v908_v32, %v907_v31 }
 0x2b3   : > { %v919_v36 = vpack.c.bf16 %v906_v34, %v905_v33  ;;  %v1331_v37 = vpop.f32.mrb[24].mxu0 }
 0x2b4   : > { %v879_v38 = vadd.f32 %v1331_v37, %v1198_v8  ;;  %v870_v39 = vpop.f32.mrb[25].mxu0 }
 0x2b5   : > { %v871_v40 = vadd.f32 %v1198_v8, %v870_v39  ;;  %v1332_v41 = vpop.f32.mrb[26].mxu0  ;;  %1349 = vmatprep.mubr.msk.bf16.mxu1 %vm595_vm1, %v919_v36 }
 0x2b6   : > { %v882_v42 = vadd.f32 %v1332_v41, %v1198_v8  ;;  %v873_v43 = vpop.f32.mrb[27].mxu0  ;;  %1350 = vmatmul.mubr.msk.bf16.gmra.mrb[20].mxu1 %vm595_vm1, %v920_v35  ;;  %v911_v45 = vmax.f32 %v879_v38, 0.0 }
 0x2b7   : > { %v874_v44 = vadd.f32 %v1198_v8, %v873_v43  ;;  %v909_v47 = vmax.f32 %v871_v40, 0.0 }
 0x2b8   : > { %v912_v46 = vmax.f32 %v882_v42, 0.0 }
 0x2b9   : > { %v910_v48 = vmax.f32 %v874_v44, 0.0 }
 0x2ba   : > { %v922_v49 = vpack.c.bf16 %v912_v46, %v911_v45 }
 0x2bb   : > { %v921_v50 = vpack.c.bf16 %v910_v48, %v909_v47  ;;  %v1335_v51 = vpop.f32.mrb[28].mxu0 }
 0x2bc   : > { %v895_v52 = vadd.f32 %v1335_v51, %v1198_v8  ;;  %v886_v53 = vpop.f32.mrb[29].mxu0 }
 0x2bd   : > { %v887_v54 = vadd.f32 %v1198_v8, %v886_v53  ;;  %v1336_v55 = vpop.f32.mrb[30].mxu0  ;;  %1353 = vmatprep.mubr.msk.bf16.mxu1 %vm595_vm1, %v921_v50 }
 0x2be   : > { %v898_v56 = vadd.f32 %v1336_v55, %v1198_v8  ;;  %v889_v57 = vpop.f32.mrb[31].mxu0  ;;  %1354 = vmatmul.mubr.msk.bf16.gmra.mrb[24].mxu1 %vm595_vm1, %v922_v49  ;;  %v915_v59 = vmax.f32 %v895_v52, 0.0 }
 0x2bf   : > { %v890_v58 = vadd.f32 %v1198_v8, %v889_v57  ;;  %v913_v61 = vmax.f32 %v887_v54, 0.0 }
 0x2c0   : > { %v916_v60 = vmax.f32 %v898_v56, 0.0 }
 0x2c1   : > { %v914_v62 = vmax.f32 %v890_v58, 0.0 }
 0x2c2   : > { %v924_v63 = vpack.c.bf16 %v916_v60, %v915_v59 }
 0x2c3   : > { %v923_v0 = vpack.c.bf16 %v914_v62, %v913_v61 }
 0x2c5   : > { %1357 = vmatprep.mubr.msk.bf16.mxu1 %vm595_vm1, %v923_v0 }
 0x2c6   : > { %1358 = vmatmul.mubr.msk.bf16.gmra.mrb[28].mxu1 %vm595_vm1, %v924_v63 }
 0x381   : > { %v1347_v2 = vpop.f32.mrb[16].mxu1 }
 0x382   : > { %v1031_v3 = vadd.f32 %v1347_v2, %v1211_v1  ;;  %v1022_v4 = vpop.f32.mrb[17].mxu1 }
 0x383   : > { %v1023_v5 = vadd.f32 %v1211_v1, %v1022_v4  ;;  %v1348_v6 = vpop.f32.mrb[18].mxu1 }
 0x384   : > { %1088 = vst.msk [vmem:[%s1549_s12 + $0x10] sm:$0xff] %vm1085_vm2, %v1031_v3  ;;  %v1034_v7 = vadd.f32 %v1348_v6, %v1211_v1  ;;  %v1025_v8 = vpop.f32.mrb[19].mxu1 }
 0x385   : > { %1086 = vst.msk [vmem:[%s1549_s12] sm:$0xff] %vm1085_vm2, %v1023_v5  ;;  %v1026_v9 = vadd.f32 %v1211_v1, %v1025_v8 }
 0x386   : > { %1089 = vst.msk [vmem:[%s1549_s12 + $0x18] sm:$0xff] %vm1085_vm2, %v1034_v7 }
 0x387   : > { %1087 = vst.msk [vmem:[%s1549_s12 + $0x8] sm:$0xff] %vm1085_vm2, %v1026_v9 }
 0x389   : > { %v1351_v10 = vpop.f32.mrb[20].mxu1 }
 0x38a   : > { %v1047_v11 = vadd.f32 %v1351_v10, %v1211_v1  ;;  %v1038_v12 = vpop.f32.mrb[21].mxu1 }
 0x38b   : > { %v1039_v13 = vadd.f32 %v1211_v1, %v1038_v12  ;;  %v1352_v14 = vpop.f32.mrb[22].mxu1 }
 0x38c   : > { %1092 = vst.msk [vmem:[%s1549_s12 + $0x30] sm:$0xff] %vm1085_vm2, %v1047_v11  ;;  %v1050_v15 = vadd.f32 %v1352_v14, %v1211_v1  ;;  %v1041_v16 = vpop.f32.mrb[23].mxu1 }
 0x38d   : > { %1090 = vst.msk [vmem:[%s1549_s12 + $0x20] sm:$0xff] %vm1085_vm2, %v1039_v13  ;;  %v1042_v17 = vadd.f32 %v1211_v1, %v1041_v16 }
 0x38e   : > { %1093 = vst.msk [vmem:[%s1549_s12 + $0x38] sm:$0xff] %vm1085_vm2, %v1050_v15 }
 0x38f   : > { %1091 = vst.msk [vmem:[%s1549_s12 + $0x28] sm:$0xff] %vm1085_vm2, %v1042_v17 }
 0x391   : > { %v1355_v18 = vpop.f32.mrb[24].mxu1 }
 0x392   : > { %v1063_v19 = vadd.f32 %v1355_v18, %v1211_v1  ;;  %v1054_v20 = vpop.f32.mrb[25].mxu1 }
 0x393   : > { %v1055_v21 = vadd.f32 %v1211_v1, %v1054_v20  ;;  %v1356_v22 = vpop.f32.mrb[26].mxu1 }
 0x394   : > { %1096 = vst.msk [vmem:[%s1549_s12 + $0x50] sm:$0xff] %vm1085_vm2, %v1063_v19  ;;  %v1066_v23 = vadd.f32 %v1356_v22, %v1211_v1  ;;  %v1057_v24 = vpop.f32.mrb[27].mxu1 }
 0x395   : > { %1094 = vst.msk [vmem:[%s1549_s12 + $0x40] sm:$0xff] %vm1085_vm2, %v1055_v21  ;;  %v1058_v25 = vadd.f32 %v1211_v1, %v1057_v24 }
 0x396   : > { %1097 = vst.msk [vmem:[%s1549_s12 + $0x58] sm:$0xff] %vm1085_vm2, %v1066_v23 }
 0x397   : > { %1095 = vst.msk [vmem:[%s1549_s12 + $0x48] sm:$0xff] %vm1085_vm2, %v1058_v25 }
 0x399   : > { %v1359_v26 = vpop.f32.mrb[28].mxu1 }
 0x39a   : > { %v1079_v27 = vadd.f32 %v1359_v26, %v1211_v1  ;;  %v1070_v28 = vpop.f32.mrb[29].mxu1 }
 0x39b   : > { %v1071_v29 = vadd.f32 %v1211_v1, %v1070_v28  ;;  %v1360_v30 = vpop.f32.mrb[30].mxu1 }
 0x39c   : > { %1100 = vst.msk [vmem:[%s1549_s12 + $0x70] sm:$0xff] %vm1085_vm2, %v1079_v27  ;;  %v1082_v31 = vadd.f32 %v1360_v30, %v1211_v1  ;;  %v1073_v32 = vpop.f32.mrb[31].mxu1 }
 0x39d   : > { %1098 = vst.msk [vmem:[%s1549_s12 + $0x60] sm:$0xff] %vm1085_vm2, %v1071_v29  ;;  %v1074_v33 = vadd.f32 %v1211_v1, %v1073_v32 }
 0x39e   : > { %1101 = vst.msk [vmem:[%s1549_s12 + $0x78] sm:$0xff] %vm1085_vm2, %v1082_v31 }
 0x39f   : > { %1099 = vst.msk [vmem:[%s1549_s12 + $0x68] sm:$0xff] %vm1085_vm2, %v1074_v33 }
 0x3a0 PF: > { %s21_s11 = sadd.s32 1, %s1396_s11  }
 0x3a1   : > { %p18_p4 = scmp.ge.s32.totalorder %s21_s11, 5  }
 0x3a3   :  { %20 = sbr.rel (!%p18_p4) target bundleno = 3 (0x3), region = 86 }

</bundles_post_ra>
